<compile_context>
chip_gen: v7x
topology: tpu7x:2x2x1
jax: 0.10.0
libtpu: 0.0.40
codegen_flags: <defaults>
</compile_context>

<pallas_src>
import functools

import jax
import jax.numpy as jnp
from jax.experimental import pallas as pl
from jax.experimental.pallas import tpu as pltpu

BN_EPS = 1e-5


def _residual_fc_kernel(x_ref, w_ref, gamma_ref, beta_ref, o_ref, *scratch,
                        tile, x_resident, acc_in_out, matmul_dtype):
    """Grid: (d, k) = (output-feature tile [parallel], contraction tile [arbitrary])."""
    si = 0
    if acc_in_out:
        acc_ref = o_ref                  # f32 output block doubles as the accumulator
    else:
        acc_ref = scratch[si]            # separate f32 accumulator scratch
        si += 1
    xres_ref = None if x_resident else scratch[si]

    d = pl.program_id(0)
    k = pl.program_id(1)

    @pl.when(k == 0)
    def _():
        # Zero-init.  The Linear bias is intentionally omitted: train-mode BN
        # subtracts the batch mean, which cancels a per-feature constant shift
        # exactly, so dropping it is a numerical no-op.
        acc_ref[...] = jnp.zeros_like(acc_ref)

    if x_resident:
        # x is fully VMEM-resident (constant index map -> DMA'd from HBM once);
        # slice the current K tile in-kernel.
        kk = pl.multiple_of(k * tile, tile)
        x_k = x_ref[:, pl.ds(kk, tile)]
    else:
        # Streamed fallback for large x: (N, T) K-tiles.  tk == td, so the tile
        # seen at k == d is exactly the residual slice for this output tile.
        x_k = x_ref[...]

        @pl.when(k == d)
        def _():
            xres_ref[...] = x_k

    # MXU partial matmul for this K tile.  The weight arrives pre-transposed to
    # [in, out] and pre-cast to the matmul dtype, so this is a plain
    # last-dim x first-dim contraction: no in-kernel transpose, no weight cast.
    acc_ref[...] += jnp.dot(x_k.astype(matmul_dtype), w_ref[...],
                            preferred_element_type=jnp.float32)

    @pl.when(k == pl.num_programs(1) - 1)
    def _():
        y = acc_ref[...]                                     # [N, T] linear output, f32
        # BatchNorm1d (training): per-feature batch mean / biased variance.
        mean = jnp.mean(y, axis=0, keepdims=True)            # [1, T]
        diff = y - mean
        var = jnp.mean(diff * diff, axis=0, keepdims=True)   # [1, T]
        bn = diff * jax.lax.rsqrt(var + BN_EPS) * gamma_ref[...] + beta_ref[...]
        act = jnp.maximum(bn, 0.0)                           # ReLU
        if x_resident:
            dd = pl.multiple_of(d * tile, tile)
            x_res = x_ref[:, pl.ds(dd, tile)]
        else:
            x_res = xres_ref[...]
        o_ref[...] = (x_res.astype(jnp.float32) + act).astype(o_ref.dtype)


def prepare_linear_weight(weight, matmul_dtype=jnp.bfloat16):
    """One-time parameter prep (do at init time, not per forward call):
    PyTorch Linear weight [out, in] -> [in, out], cast to the MXU matmul dtype."""
    return jnp.asarray(weight).T.astype(matmul_dtype)


def _vmem_capacity_bytes():
    try:
        return int(pltpu.get_tpu_info().vmem_capacity_bytes)
    except Exception:
        return 64 * 1024 * 1024          # conservative fallback: v7x per-TC VMEM


def residual_fc(x, w_t, gamma, beta, *, tile=None):
    """out = x + ReLU(BatchNorm1d_train(x @ W^T)).

    x: [N, D]; w_t: [D_in, D_out] pre-prepped weight (prepare_linear_weight);
    gamma/beta: [D].  The Linear bias is not an input: train-mode BN cancels a
    per-feature constant shift exactly, so it has no effect on the output."""
    N, D = x.shape
    d_in, d_out = w_t.shape
    assert d_in == D and d_out == D, "residual add requires input_dim == output_dim"
    assert D % 128 == 0, f"feature dim {D} must be a multiple of 128 (pad it)"

    xb = jnp.dtype(x.dtype).itemsize
    wb = jnp.dtype(w_t.dtype).itemsize
    out_dtype = x.dtype
    ob = jnp.dtype(out_dtype).itemsize
    acc_in_out = jnp.dtype(out_dtype) == jnp.dtype(jnp.float32)

    cap = _vmem_capacity_bytes()
    budget = int(0.80 * cap)             # headroom for compiler-internal scratch

    # Keep x fully VMEM-resident (single HBM read) whenever it fits; otherwise
    # fall back to streaming x K-tiles (re-read once per d-tile).
    x_resident = (N * D * xb) <= min(16 * 1024 * 1024, budget // 4)

    def est_bytes(T):
        e = 2 * T * T * wb + 2 * N * T * ob + 4 * 2 * T * 4   # W, out, gamma/beta
        if not acc_in_out:
            e += N * T * 4                                     # f32 accumulator
        if x_resident:
            e += 2 * N * D * xb                                # resident x (2 pipeline bufs)
        else:
            e += 2 * N * T * xb + N * T * xb                   # x tile + residual stash
        return e

    if tile is None:
        cands = [t for t in (512, 256, 128) if D % t == 0]
        fitting = [t for t in cands if est_bytes(t) <= budget] or [cands[-1]]
        # Prefer an even d-extent (v7x megacore balance) if it costs at most
        # one halving of T; otherwise take the largest fitting tile.
        even = [t for t in fitting if (D // t) % 2 == 0 or D // t == 1]
        tile = even[0] if even and even[0] >= fitting[0] // 2 else fitting[0]
    T = int(tile)
    assert D % T == 0 and T % 128 == 0, \
        f"tile {T} must divide feature dim {D} and be a multiple of 128"
    n_t = D // T                                                # n_d == n_k (square weight)

    vmem_limit = int(min(budget, max(est_bytes(T) + (8 << 20), 32 << 20)))

    g2 = gamma.reshape(1, D).astype(jnp.float32)
    b2 = beta.reshape(1, D).astype(jnp.float32)

    scratch_shapes = []
    if not acc_in_out:
        scratch_shapes.append(pltpu.VMEM((N, T), jnp.float32))   # f32 accumulator
    if not x_resident:
        scratch_shapes.append(pltpu.VMEM((N, T), x.dtype))       # residual-x stash

    if x_resident:
        # Constant index map -> the (N, D) block is DMA'd once and revisited.
        # (pipeline_mode=pl.Buffered(1) would drop the unused second buffer if
        # VMEM ever gets tight.)
        x_spec = pl.BlockSpec((N, D), lambda d, k: (0, 0))
    else:
        x_spec = pl.BlockSpec((N, T), lambda d, k: (0, k))

    kernel = functools.partial(_residual_fc_kernel,
                               tile=T,
                               x_resident=x_resident,
                               acc_in_out=acc_in_out,
                               matmul_dtype=jnp.dtype(w_t.dtype))

    return pl.pallas_call(
        kernel,
        out_shape=jax.ShapeDtypeStruct((N, D), out_dtype),
        grid_spec=pltpu.PrefetchScalarGridSpec(
            num_scalar_prefetch=0,
            grid=(n_t, n_t),                                     # (d, k)
            in_specs=[
                x_spec,                                          # x (resident or K-tiled)
                pl.BlockSpec((T, T), lambda d, k: (k, d)),       # W^T tile, [in, out] layout
                pl.BlockSpec((1, T), lambda d, k: (0, d)),       # gamma
                pl.BlockSpec((1, T), lambda d, k: (0, d)),       # beta
            ],
            out_specs=pl.BlockSpec((N, T), lambda d, k: (0, d)),
            scratch_shapes=scratch_shapes,
        ),
        compiler_params=pltpu.CompilerParams(
            dimension_semantics=("parallel", "arbitrary"),
            vmem_limit_bytes=vmem_limit,
        ),
    )(x, w_t, g2, b2)


def _reference(x, weight, bias, gamma, beta, matmul_dtype=jnp.bfloat16):
    """Full module semantics (Linear with bias + train-mode BN + ReLU + residual)."""
    xm = x.astype(matmul_dtype)
    wm = weight.astype(matmul_dtype)
    y = jnp.dot(xm, wm.T, preferred_element_type=jnp.float32) + bias
    mean = jnp.mean(y, axis=0, keepdims=True)
    var = jnp.mean((y - mean) ** 2, axis=0, keepdims=True)
    bn = (y - mean) * jax.lax.rsqrt(var + BN_EPS) * gamma + beta
    return (x.astype(jnp.float32) + jnp.maximum(bn, 0.0)).astype(x.dtype)


if __name__ == "__main__":
    # batch=8, input_dim=output_dim=512 (residual requires equal dims);
    # tile=256 exercises a 2x2 grid (multi-tile on both d and k axes).
    N, D = 8, 512
    key = jax.random.PRNGKey(0)
    kx, kw, kb, kg, kbe = jax.random.split(key, 5)

    x = jax.random.normal(kx, (N, D), dtype=jnp.float32)
    # Synthetic, PyTorch-Linear-shaped weight [out, in] and bias.
    bound = 1.0 / jnp.sqrt(jnp.float32(D))
    weight = jax.random.uniform(kw, (D, D), jnp.float32, -bound, bound)
    bias = jax.random.uniform(kb, (D,), jnp.float32, -bound, bound)
    # Perturbed affine params (defaults are gamma=1, beta=0) for a stronger check.
    gamma = 1.0 + 0.1 * jax.random.normal(kg, (D,), jnp.float32)
    beta = 0.1 * jax.random.normal(kbe, (D,), jnp.float32)

    # One-time parameter prep: [out, in] f32 -> [in, out] bf16.
    w_t = prepare_linear_weight(weight, jnp.bfloat16)

    out = residual_fc(x, w_t, gamma, beta, tile=256)
    out = jax.block_until_ready(out)
    assert out.shape == (N, D)

    # Also exercise the auto tile / VMEM-budget path.
    out_auto = jax.block_until_ready(residual_fc(x, w_t, gamma, beta))

    # Matched-precision reference (bf16 matmul operands, f32 accumulation).
    ref_match = _reference(x, weight, bias, gamma, beta, matmul_dtype=jnp.bfloat16)
    err = float(jnp.max(jnp.abs(out - ref_match)))
    assert err < 2e-3, f"mismatch vs matched-precision reference: {err}"
    err_auto = float(jnp.max(jnp.abs(out_auto - ref_match)))
    assert err_auto < 2e-3, f"auto-tile mismatch vs matched-precision reference: {err_auto}"

    # Sanity check against full-f32 module semantics (bf16 quantization slack).
    ref_f32 = _reference(x, weight, bias, gamma, beta, matmul_dtype=jnp.float32)
    err32 = float(jnp.max(jnp.abs(out - ref_f32)))
    assert err32 < 5e-2, f"mismatch vs f32 reference: {err32}"

    print("KERNEL_OK")
</pallas_src>

<mosaic_0001>
module attributes {stable_mosaic.version = 11 : i64} {
  func.func @_residual_fc_kernel(%arg0: i32, %arg1: i32, %arg2: memref<8x512xf32, #tpu.memory_space<vmem>>, %arg3: memref<256x256xbf16, #tpu.memory_space<vmem>>, %arg4: memref<1x256xf32, #tpu.memory_space<vmem>>, %arg5: memref<1x256xf32, #tpu.memory_space<vmem>>, %arg6: memref<8x256xf32, #tpu.memory_space<vmem>>) attributes {dimension_semantics = [#tpu.dimension_semantics<parallel>, #tpu.dimension_semantics<arbitrary>], iteration_bounds = array<i64: 2, 2>, scalar_prefetch = 0 : i64, scratch_operands = 0 : i64, tpu.core_type = #tpu.core_type<tc>, window_params = [{pipeline_mode = #tpu.pipeline_mode<synchronous>, transform_indices = @transform_0, window_bounds = array<i64: 8, 512>}, {transform_indices = @transform_1, window_bounds = array<i64: 256, 256>}, {transform_indices = @transform_2, window_bounds = array<i64: 1, 256>}, {transform_indices = @transform_3, window_bounds = array<i64: 1, 256>}, {transform_indices = @transform_4, window_bounds = array<i64: 8, 256>}]} {
    %c0_i32 = arith.constant 0 : i32
    %0 = arith.cmpi eq, %arg1, %c0_i32 : i32
    %1 = arith.extui %0 : i1 to i32
    %c0_i32_0 = arith.constant 0 : i32
    %2 = arith.cmpi ne, %1, %c0_i32_0 : i32
    scf.if %2 {
      %cst_8 = arith.constant 0.000000e+00 : f32
      %16 = vector.broadcast %cst_8 : f32 to vector<8x256xf32>
      %c0_9 = arith.constant 0 : index
      %c0_10 = arith.constant 0 : index
      %17 = vector.load %arg6[%c0_9, %c0_10] : memref<8x256xf32, #tpu.memory_space<vmem>>, vector<8x256xf32>
      tpu.vector_store %arg6[%c0_9, %c0_10], %16 {strides = array<i32>} : memref<8x256xf32, #tpu.memory_space<vmem>>, vector<8x256xf32>,
    } else {
    }
    %c256_i32 = arith.constant 256 : i32
    %3 = arith.muli %arg1, %c256_i32 : i32
    %4 = tpu.assume_multiple %3, 256 : i32
    %c0 = arith.constant 0 : index
    %5 = arith.index_cast %4 : i32 to index
    %6 = vector.load %arg2[%c0, %5] : memref<8x512xf32, #tpu.memory_space<vmem>>, vector<8x256xf32>
    %c0_1 = arith.constant 0 : index
    %c0_2 = arith.constant 0 : index
    %7 = vector.load %arg6[%c0_1, %c0_2] : memref<8x256xf32, #tpu.memory_space<vmem>>, vector<8x256xf32>
    %8 = arith.truncf %6 : vector<8x256xf32> to vector<8x256xbf16>
    %c0_3 = arith.constant 0 : index
    %c0_4 = arith.constant 0 : index
    %9 = vector.load %arg3[%c0_3, %c0_4] : memref<256x256xbf16, #tpu.memory_space<vmem>>, vector<256x256xbf16>
    %cst = arith.constant dense<0.000000e+00> : vector<8x256xf32>
    %10 = tpu.matmul %8, %9, %cst {dimension_numbers = #tpu.dot_dimension_numbers<[1], [0], [0], [1], [0, 0, 1, 1], [], []>} : vector<8x256xbf16>, vector<256x256xbf16>, vector<8x256xf32> -> vector<8x256xf32>
    %11 = arith.addf %7, %10 : vector<8x256xf32>
    %c0_5 = arith.constant 0 : index
    %c0_6 = arith.constant 0 : index
    %12 = vector.load %arg6[%c0_5, %c0_6] : memref<8x256xf32, #tpu.memory_space<vmem>>, vector<8x256xf32>
    tpu.vector_store %arg6[%c0_5, %c0_6], %11 {strides = array<i32>} : memref<8x256xf32, #tpu.memory_space<vmem>>, vector<8x256xf32>,
    %c1_i32 = arith.constant 1 : i32
    %13 = arith.cmpi eq, %arg1, %c1_i32 : i32
    %14 = arith.extui %13 : i1 to i32
    %c0_i32_7 = arith.constant 0 : i32
    %15 = arith.cmpi ne, %14, %c0_i32_7 : i32
    scf.if %15 {
      %c0_8 = arith.constant 0 : index
      %c0_9 = arith.constant 0 : index
      %16 = vector.load %arg6[%c0_8, %c0_9] : memref<8x256xf32, #tpu.memory_space<vmem>>, vector<8x256xf32>
      %cst_10 = arith.constant dense<0.000000e+00> : vector<256xf32>
      %17 = vector.multi_reduction <add>, %16, %cst_10 [0] : vector<8x256xf32> to vector<256xf32>
      %18 = vector.shape_cast %17 : vector<256xf32> to vector<1x256xf32>
      %cst_11 = arith.constant 8.000000e+00 : f32
      %19 = vector.broadcast %cst_11 : f32 to vector<1x256xf32>
      %20 = arith.divf %18, %19 : vector<1x256xf32>
      %21 = vector.broadcast %20 : vector<1x256xf32> to vector<8x256xf32>
      %22 = arith.subf %16, %21 : vector<8x256xf32>
      %23 = arith.mulf %22, %22 : vector<8x256xf32>
      %cst_12 = arith.constant dense<0.000000e+00> : vector<256xf32>
      %24 = vector.multi_reduction <add>, %23, %cst_12 [0] : vector<8x256xf32> to vector<256xf32>
      %25 = vector.shape_cast %24 : vector<256xf32> to vector<1x256xf32>
      %cst_13 = arith.constant 8.000000e+00 : f32
      %26 = vector.broadcast %cst_13 : f32 to vector<1x256xf32>
      %27 = arith.divf %25, %26 : vector<1x256xf32>
      %cst_14 = arith.constant 9.99999974E-6 : f32
      %28 = vector.broadcast %cst_14 : f32 to vector<1x256xf32>
      %29 = arith.addf %27, %28 : vector<1x256xf32>
      %30 = math.rsqrt %29 : vector<1x256xf32>
      %31 = vector.broadcast %30 : vector<1x256xf32> to vector<8x256xf32>
      %32 = arith.mulf %22, %31 : vector<8x256xf32>
      %c0_15 = arith.constant 0 : index
      %c0_16 = arith.constant 0 : index
      %33 = vector.load %arg4[%c0_15, %c0_16] : memref<1x256xf32, #tpu.memory_space<vmem>>, vector<1x256xf32>
      %34 = vector.broadcast %33 : vector<1x256xf32> to vector<8x256xf32>
      %35 = arith.mulf %32, %34 : vector<8x256xf32>
      %c0_17 = arith.constant 0 : index
      %c0_18 = arith.constant 0 : index
      %36 = vector.load %arg5[%c0_17, %c0_18] : memref<1x256xf32, #tpu.memory_space<vmem>>, vector<1x256xf32>
      %37 = vector.broadcast %36 : vector<1x256xf32> to vector<8x256xf32>
      %38 = arith.addf %35, %37 : vector<8x256xf32>
      %cst_19 = arith.constant 0.000000e+00 : f32
      %39 = vector.broadcast %cst_19 : f32 to vector<8x256xf32>
      %40 = arith.maximumf %38, %39 : vector<8x256xf32>
      %c256_i32_20 = arith.constant 256 : i32
      %41 = arith.muli %arg0, %c256_i32_20 : i32
      %42 = tpu.assume_multiple %41, 256 : i32
      %c0_21 = arith.constant 0 : index
      %43 = arith.index_cast %42 : i32 to index
      %44 = vector.load %arg2[%c0_21, %43] : memref<8x512xf32, #tpu.memory_space<vmem>>, vector<8x256xf32>
      %45 = arith.addf %44, %40 : vector<8x256xf32>
      %c0_22 = arith.constant 0 : index
      %c0_23 = arith.constant 0 : index
      %46 = vector.load %arg6[%c0_22, %c0_23] : memref<8x256xf32, #tpu.memory_space<vmem>>, vector<8x256xf32>
      tpu.vector_store %arg6[%c0_22, %c0_23], %45 {strides = array<i32>} : memref<8x256xf32, #tpu.memory_space<vmem>>, vector<8x256xf32>,
    } else {
    }
    return
  }
  func.func @transform_0(%arg0: i32, %arg1: i32) -> (i32, i32) {
    %c0_i32 = arith.constant 0 : i32
    %c0_i32_0 = arith.constant 0 : i32
    %c0_i32_1 = arith.constant 0 : i32
    return %c0_i32, %c0_i32_0 : i32, i32
  }
  func.func @transform_1(%arg0: i32, %arg1: i32) -> (i32, i32) {
    %c0_i32 = arith.constant 0 : i32
    return %arg1, %arg0 : i32, i32
  }
  func.func @transform_2(%arg0: i32, %arg1: i32) -> (i32, i32) {
    %c0_i32 = arith.constant 0 : i32
    %c0_i32_0 = arith.constant 0 : i32
    return %c0_i32, %arg0 : i32, i32
  }
  func.func @transform_3(%arg0: i32, %arg1: i32) -> (i32, i32) {
    %c0_i32 = arith.constant 0 : i32
    %c0_i32_0 = arith.constant 0 : i32
    return %c0_i32, %arg0 : i32, i32
  }
  func.func @transform_4(%arg0: i32, %arg1: i32) -> (i32, i32) {
    %c0_i32 = arith.constant 0 : i32
    %c0_i32_0 = arith.constant 0 : i32
    return %c0_i32, %arg0 : i32, i32
  }
}

</mosaic_0001>

<bundles_post_ra>
// kernel: tpu_custom_call.1
= control target key start
LH: loop header
LB: loop body
LE: loop exit
PB: predicated region body
PF: predicated region fallthrough
CT: control target
= control target key end

     0   :  { %s1543_s0 = inlined_call_operand.hbm [shape: f32[8,512], index: 0, kind: input, shape index: {}]   ;;  %s1544_s1 = inlined_call_operand.hbm [shape: bf16[512,512], index: 1, kind: input, shape index: {}]   ;;  %s1545_s2 = inlined_call_operand.vmem [shape: f32[1,512], index: 2, kind: input, shape index: {}]   ;;  %s1546_s3 = inlined_call_operand.vmem [shape: f32[1,512], index: 3, kind: input, shape index: {}]   ;;  %s1547_s4 = inlined_call_operand.hbm [shape: f32[8,512], index: 4, kind: output, shape index: {}]  }
   0x1   :  { %1561 = sst [smem:[#allocation16_spill]] %s1543_s0 }
   0x2   :  { %1562 = sst [smem:[#allocation17_spill]] %s1547_s4 }
   0x3   :  { %9 = vsyncpa [#allocation3], 0 }
   0x4   :  { %10 = vsyncpa [#allocation6], 0 }
   0x5   :  { %12 = vsyncpa [#allocation6 + $0x1], 0 }
   0x6   :  { %13 = vsyncpa [#allocation4], 0 }
   0x7   :  { %15 = vsyncpa [#allocation4 + $0x1], 0  ;;  %s1208_s15 = smov 0   ;;  %s1210_s16 = smov 0  }
   0x8   :  { %s1212_s17 = smov 0   ;;  %s1214_s18 = smov 0  }
   0x9   :  { %s1216_s19 = smov 0   ;;  %s1218_s20 = smov 0  }
   0xa   :  { %s1220_s21 = smov 0   ;;  %s1222_s22 = smov 0  }
   0xb   :  { %s1224_s23 = smov 0   ;;  %s1226_s24 = smov 0  }
   0xc   :  { %s1228_s25 = smov 0  }
   0xd LB: > { %1563 = sst [smem:[#allocation11_spill]] %s1134_s15  ;;  %s760_s26 = sadd.s32 4294967295, %s1174_s25   ;;  %s1174_s25 = sphi %s1228_s25, %s21_s25   ;;  %s1170_s24 = sphi %s1226_s24, %s1600_s24   ;;  %s1166_s23 = sphi %s1224_s23, %s1599_s23   ;;  %s1162_s22 = sphi %s1222_s22, %s1598_s22   ;;  %s1158_s21 = sphi %s1220_s21, %s1597_s21   ;;  %s1154_s20 = sphi %s1218_s20, %s1596_s20   ;;  %s1150_s19 = sphi %s1216_s19, %s1595_s19   ;;  %s1146_s18 = sphi %s1214_s18, %s1594_s18   ;;  %s1142_s17 = sphi %s1212_s17, %s1593_s17   ;;  %s1138_s16 = sphi %s1210_s16, %s1592_s16   ;;  %s1134_s15 = sphi %s1208_s15, %s1591_s15  }
   0xe   : > { %1564 = sst [smem:[#allocation12_spill]] %s1174_s25  ;;  %s761_s27 = sadd.s32 4294967294, %s1174_s25  }
   0xf   : > { %p70_p0 = scmp.ne.s32.totalorder %s1154_s20, %s1150_s19  ;;  %p71_p1 = scmp.eq.s32.totalorder %s1174_s25, 0 }
  0x10   : > { %p76_p2 = scmp.ne.s32.totalorder %s1150_s19, %s1146_s18  ;;  %p1268_p3 = scmp.eq.s32.totalorder %s760_s26, 0 }
  0x11   : > { %p1273_p4 = por %p71_p1, %p70_p0  ;;  %p151_p5 = scmp.ne.s32.totalorder %s1142_s17, %s1138_s16 }
  0x12   : > { %s1565_s29 = scalar_select %p1268_p3, 1, 0 }
  0x13   : > { %p1281_p6 = por %p1268_p3, %p76_p2  ;;  %p152_p7 = scmp.eq.s32.totalorder %s760_s26, 3 }
  0x14   : > { %p157_p8 = scmp.ne.s32.totalorder %s1138_s16, %s1134_s15  ;;  %p158_p9 = scmp.eq.s32.totalorder %s761_s27, 3 }
  0x15   : > { %s1567_s6 = scalar_select %p1281_p6, 1, 0 }
  0x16   : > { %p1287_p10 = por %p152_p7, %p151_p5  ;;  %p762_p11 = scmp.ge.s32.totalorder %s1174_s25, 1 }
  0x17   : > { %p1292_p12 = por %p158_p9, %p157_p8  ;;  %p165_p13 = scmp.lt.s32.totalorder %s1174_s25, 5 }
  0x18   : > { %s1568_s7 = scalar_select %p1287_p10, 1, 0 }
  0x19   : > { %s1569_s8 = scalar_select %p1292_p12, 1, 0 }
  0x1a   : > { %p1297_p0 = pnand %p762_p11, %p165_p13  ;;  %s1176_s10 = smov [#allocation2]  }
  0x1b   : > { %1570 = sst [smem:[#allocation13_spill]] %s1569_s8  ;;  %s178_s11 = sshll.u32 %s1176_s10, 4  ;;  %s179_s11 = int_to_ptr.vmem [resolvable:$true] %s178_s11 }
  0x1c   : > { %s1571_s9 = scalar_select %p1297_p0, 1, 0 }
  0x1d   : > { %p829_p1 = pneg %p1297_p0  ;;  %p842_p2 = scmp.lt.s32.totalorder %s1174_s25, 4 }
  0x1e   : > { %s1574_s0 = sld [smem:[#allocation16_spill]] }
  0x1f   : > { %p1306_p5 = pnand %p829_p1, %p1268_p3  ;;  %p1312_p7 = pnand %p842_p2, %p1273_p4 }
  0x21   : > { %s1573_s13 = scalar_select %p1312_p7, 1, 0 }
  0x22   : > { %p992_p9 = pneg %p1306_p5 }
  0x24   : > { %s990_s26 = scalar_lea.hbm %s1574_s0, 512 }
  0x25   : > { %p991_p8 = scmp.ne.s32.totalorder %s1574_s0, %s990_s26  ;;  %p997_p1 = scmp.lt.u32.totalorder %s990_s26, %s1574_s0 }
  0x27   : > { %p993_p11 = pnand %p992_p9, %p991_p8 }
  0x29   : > { %p994_p13 = pneg %p993_p11 }
  0x2b   : > { %p999_p4 = pnand %p997_p1, %p994_p13 }
  0x2d   : > { %1002 = shalt.err (!%p999_p4)
}
  0x2e   : > { %s1003_s5 = scalar_lea.vmem %s179_s11, 512  ;;  %p1011_p6 = scmp.lt.s32.totalorder %s179_s11, %s179_s11 }
  0x2f   : > { %p1004_p2 = scmp.ne.s32.totalorder %s179_s11, %s1003_s5  ;;  %p1012_p3 = scmp.lt.s32.totalorder %s1003_s5, %s1003_s5 }
  0x31   : > { %p1006_p12 = pnand %p1004_p2, %p992_p9  ;;  %p1013_p0 = por %p1012_p3, %p1011_p6 }
  0x33   : > { %p1007_p10 = pneg %p1006_p12 }
  0x35   : > { %p1014_p7 = pnand %p1013_p0, %p1007_p10 }
  0x37   : > { %1017 = shalt.err (!%p1014_p7)
}
  0x38   : > { %832 = dma.hbm_to_vmem [thread:$0]  (!%p1306_p5), %s1574_s0, 512, %s179_s11, [#allocation3]  }
  0x39   : > { %s30_s28 = sadd.s32 1, %s1166_s23  ;;  %s33_s30 = sadd.s32 1, %s1170_s24 }
  0x3a   : > { %p31_p12 = scmp.ge.s32.totalorder %s30_s28, 2  ;;  %s189_s26 = sand.u32 1, %s1154_s20  }
  0x3b   : > { %s765_s27 = sshll.u32 %s189_s26, 8  ;;  %s767_s10 = sshll.u32 %s1170_s24, 1 }
  0x3c   : > { %s1602_s28 = smov (%p31_p12, %s30_s28), 0  ;;  %s1604_s30 = smov (!%p31_p12, %s33_s30), %s1170_s24 }
  0x3d   : > { %1575 = sst [smem:[#allocation14_spill]] %s1602_s28  ;;  %s58_s12 = ssub.s32 %s1166_s23, %s1602_s28 }
  0x3e   : > { %p35_p3 = scmp.ge.s32.totalorder %s1604_s30, 2  ;;  %s819_s5 = sshll.u32 %s1166_s23, 7 }
  0x3f   : > { %s193_s14 = scalar_lea.vmem [#allocation5], %s765_s27  ;;  %s200_s18 = sadd.s32 %s819_s5, %s767_s10 }
  0x40   : > { %s203_s11 = sshll.u32 %s193_s14, 4  ;;  %s1606_s30 = smov (%p35_p3, %s1604_s30), 0  ;;  %s1344_s11 = int_to_ptr.vmem [resolvable:$true] %s203_s11 }
  0x41   : > { %1576 = sst [smem:[#allocation15_spill]] %s1606_s30  ;;  %s59_s0 = ssub.s32 %s1170_s24, %s1606_s30 }
  0x42   : > { %s769_s8 = sshll.u32 %s200_s18, 6  ;;  %s60_s15 = sor.u32 %s59_s0, %s58_s12 }
  0x43   : > { %p139_p6 = scmp.eq.s32.totalorder %s59_s0, 0  ;;  %p61_p10 = scmp.eq.s32.totalorder %s60_s15, 0 }
  0x44   : > { %s1351_s4 = scalar_lea.hbm %s1544_s1, %s769_s8  ;;  %s1577_s27 = sadd.s32 1, %s1142_s17 }
  0x45   : > { %s1356_s14 = scalar_select %p139_p6, %s1142_s17, %s1577_s27  }
  0x46   : > { %s1578_s10 = sadd.s32 1, %s1154_s20  ;;  %s1363_s30 = scalar_lea.sflag [#allocation6], %s189_s26 }
  0x47   : > { %s1361_s5 = scalar_select %p61_p10, %s1154_s20, %s1578_s10  }
  0x48   : > { %s1018_s12 = scalar_lea.hbm %s1351_s4, 4096  ;;  %p1579_p5 = scmp.ne.s32.totalorder %s1573_s13, 0 }
  0x49   : > { %p1019_p0 = scmp.ne.s32.totalorder %s1351_s4, %s1018_s12  ;;  %s1023_s25 = scalar_lea.hbm %s1544_s1, 16384 }
  0x4a   : > { %p1020_p7 = pneg %p1579_p5  ;;  %p1024_p11 = scmp.lt.u32.totalorder %s1351_s4, %s1544_s1 }
  0x4b   : > { %p1025_p13 = scmp.lt.u32.totalorder %s1023_s25, %s1018_s12  ;;  %p1027_p4 = scmp.lt.u32.totalorder %s1018_s12, %s1351_s4 }
  0x4c   : > { %p1021_p8 = pnand %p1020_p7, %p1019_p0 }
  0x4d   : > { %p1026_p1 = por %p1025_p13, %p1024_p11 }
  0x4e   : > { %p1022_p9 = pneg %p1021_p8 }
  0x4f   : > { %p1028_p2 = por %p1027_p4, %p1026_p1 }
  0x51   : > { %p1029_p12 = pnand %p1028_p2, %p1022_p9 }
  0x53   : > { %1032 = shalt.err (!%p1029_p12)
}
  0x54   : > { %s1033_s26 = scalar_lea.vmem %s1344_s11, 4096  ;;  %s1177_s18 = smov [#allocation5]  }
  0x55   : > { %p1034_p3 = scmp.ne.s32.totalorder %s1344_s11, %s1033_s26  ;;  %s1038_s27 = sshll.u32 %s1177_s18, 4  ;;  %s1039_s27 = int_to_ptr.vmem [resolvable:$false] %s1038_s27 }
  0x56   : > { %s1040_s10 = scalar_lea.vmem %s1039_s27, 8192  ;;  %p1041_p0 = scmp.lt.s32.totalorder %s1344_s11, %s1039_s27 }
  0x57   : > { %p1036_p6 = pnand %p1034_p3, %p1020_p7  ;;  %p1042_p8 = scmp.lt.s32.totalorder %s1040_s10, %s1033_s26 }
  0x59   : > { %p1037_p10 = pneg %p1036_p6  ;;  %p1043_p11 = por %p1042_p8, %p1041_p0 }
  0x5b   : > { %p1044_p13 = pnand %p1043_p11, %p1037_p10 }
  0x5d   : > { %1047 = shalt.err (!%p1044_p13)
}
  0x5e   : > { %s1178_s12 = smov 256   ;;  %s1179_s0 = smov 128  }
  0x5f   : > { %s1180_s15 = smov 8   ;;  %p1580_p7 = scmp.ne.s32.totalorder %s1571_s9, 0 }
  0x60   : > { %836 = dma.hbm_to_vmem [thread:$0]  (!%p1579_p5), %s1351_s4, 4096, %s1344_s11, %s1363_s30, %s1178_s12, %s1179_s0, %s1180_s15  }
  0x61   : > { %231 = sbr.rel (%p1580_p7) target bundleno = 491 (0x1eb), region = 36  ;;  %p1581_p9 = scmp.ne.s32.totalorder (!%p1580_p7), %s1565_s29, 0 }
  0x68   : > { %1121 = dma.done.wait (%p1581_p9), [#allocation3], 512  }
  0x69   : > { %1123 = vsyncadd (%p1581_p9), [#allocation3], 4294966784  ;;  %s237_s25 = sand.u32 1, %s1150_s19   ;;  %p1582_p1 = scmp.ne.s32.totalorder %s1567_s6, 0 }
  0x6a   : > { %s772_s8 = sshll.u32 %s237_s25, 8  ;;  %s238_s28 = scalar_lea.sflag [#allocation6], %s237_s25 }
  0x6b   : > { %s1398_s26 = scalar_lea.vmem [#allocation5], %s772_s8 }
  0x6c   : > { %1125 = dma.done.wait (%p1582_p1), %s238_s28, 4096  }
  0x6d   : > { %1127 = vsyncadd (%p1582_p1), %s238_s28, 4294963200  ;;  %s271_s4 = sand.u32 1, %s1138_s16   ;;  %s774_s9 = sshll.u32 %s1162_s22, 1 }
  0x6e   : > { %s773_s29 = sshll.u32 %s271_s4, 4  ;;  %p277_p5 = scmp.lt.s32.totalorder %s774_s9, 3 }
  0x6f   : > { %s1418_s10 = scalar_lea.vmem [#allocation7], %s773_s29  ;;  %p776_p4 = scmp.ne.s32.totalorder %s1158_s21, 0 }
  0x70   : > { %s1608_s9 = smov (!%p277_p5, %s774_s9), 3  ;;  %v1181_v0 = vmov (!%p776_p4), 0.0  }
  0x71   : > { %s279_s11 = scalar_lea.vmem %s1545_s2, %s1608_s9  ;;  %s284_s6 = scalar_lea.vmem %s1546_s3, %s1608_s9  ;;  %291 = vst [vmem:[%s1418_s10] sm:$0xff] (!%p776_p4), %v1181_v0  ;;  %292 = vst [vmem:[%s1418_s10 + $0x8] sm:$0xff] (!%p776_p4), %v1181_v0 }
  0x72   : > { %290 = sbr.rel (%p776_p4) target bundleno = 121 (0x79), region = 48 }
  0x79 PF: > { %v938_v1 = vld [vmem:[%s1398_s26 + $0x4] ss:$8 sps:$4 sm:$0xff]   ;;  %v940_v2 = vld [vmem:[%s1398_s26] ss:$8 sps:$4 sm:$0xff]   ;;  %v941_v3 = vld [vmem:[%s1398_s26 + $0x14] ss:$8 sps:$4 sm:$0xff]  }
  0x7a   : > { %496 = vmatprep.subr.bf16.mxu0 %v938_v1  ;;  %v943_v4 = vld [vmem:[%s1398_s26 + $0x10] ss:$8 sps:$4 sm:$0xff]   ;;  %v944_v5 = vld [vmem:[%s1398_s26 + $0x24] ss:$8 sps:$4 sm:$0xff]   ;;  %v946_v6 = vld [vmem:[%s1398_s26 + $0x20] ss:$8 sps:$4 sm:$0xff]  }
  0x7b   : > { %497 = vmatpush1.bf16.msra.mxu0 %v940_v2  ;;  %v947_v7 = vld [vmem:[%s1398_s26 + $0x34] ss:$8 sps:$4 sm:$0xff]   ;;  %s777_s12 = sshll.u32 %s1158_s21, 8  ;;  %v949_v8 = vld [vmem:[%s1398_s26 + $0x30] ss:$8 sps:$4 sm:$0xff]   ;;  %p811_p2 = scmp.ne.s32.totalorder %s1158_s21, 1 }
  0x7c   : > { %498 = vmatprep.subr.bf16.mxu0 %v941_v3  ;;  %v950_v9 = vld [vmem:[%s1398_s26 + $0x44] ss:$8 sps:$4 sm:$0xff]   ;;  %s294_s0 = sshra.s32 %s777_s12, 7  ;;  %v952_v10 = vld [vmem:[%s1398_s26 + $0x40] ss:$8 sps:$4 sm:$0xff]   ;;  %s812_s21 = sshll.u32 (!%p811_p2), %s1162_s22, 8 }
  0x7d   : > { %s778_s15 = sshll.u32 %s294_s0, 3  ;;  %v953_v11 = vld [vmem:[%s1398_s26 + $0x54] ss:$8 sps:$4 sm:$0xff]   ;;  %v955_v12 = vld [vmem:[%s1398_s26 + $0x50] ss:$8 sps:$4 sm:$0xff]  }
  0x7e   : > { %v956_v13 = vld [vmem:[%s1398_s26 + $0x64] ss:$8 sps:$4 sm:$0xff]   ;;  %s1437_s25 = scalar_lea.vmem [#allocation2], %s778_s15  ;;  %v958_v16 = vld [vmem:[%s1398_s26 + $0x60] ss:$8 sps:$4 sm:$0xff]  }
  0x7f   : > { %499 = vmatpush1.bf16.msra.mxu0 %v943_v4  ;;  %v299_v14 = vld [vmem:[%s1437_s25 + $0x8] sm:$0xff]  ;;  %v959_v17 = vld [vmem:[%s1398_s26 + $0x74] ss:$8 sps:$4 sm:$0xff]   ;;  %v961_v18 = vld [vmem:[%s1398_s26 + $0x70] ss:$8 sps:$4 sm:$0xff]  }
  0x80   : > { %500 = vmatprep.subr.bf16.mxu0 %v944_v5  ;;  %v303_v15 = vpack.c.bf16 %v299_v14, %v299_v14  ;;  %v962_v19 = vld [vmem:[%s1398_s26 + $0x84] ss:$8 sps:$4 sm:$0xff]   ;;  %v964_v20 = vld [vmem:[%s1398_s26 + $0x80] ss:$8 sps:$4 sm:$0xff]   ;;  %v965_v21 = vld [vmem:[%s1398_s26 + $0x94] ss:$8 sps:$4 sm:$0xff]   ;;  %v588_v14 = vlaneseq (!%p811_p2) }
  0x81   : > { %v967_v22 = vld [vmem:[%s1398_s26 + $0x90] ss:$8 sps:$4 sm:$0xff]   ;;  %v968_v23 = vld [vmem:[%s1398_s26 + $0xa4] ss:$8 sps:$4 sm:$0xff]   ;;  %v970_v24 = vld [vmem:[%s1398_s26 + $0xa0] ss:$8 sps:$4 sm:$0xff]  }
  0x82   : > { %528 = vmatprep.mubr.bf16.mxu0 %v303_v15  ;;  %v971_v25 = vld [vmem:[%s1398_s26 + $0xb4] ss:$8 sps:$4 sm:$0xff]   ;;  %v973_v26 = vld [vmem:[%s1398_s26 + $0xb0] ss:$8 sps:$4 sm:$0xff]   ;;  %v974_v27 = vld [vmem:[%s1398_s26 + $0xc4] ss:$8 sps:$4 sm:$0xff]  }
  0x83   : > { %501 = vmatpush1.bf16.msra.mxu0 %v946_v6  ;;  %v976_v28 = vld [vmem:[%s1398_s26 + $0xc0] ss:$8 sps:$4 sm:$0xff]   ;;  %v977_v29 = vld [vmem:[%s1398_s26 + $0xd4] ss:$8 sps:$4 sm:$0xff]   ;;  %v979_v30 = vld [vmem:[%s1398_s26 + $0xd0] ss:$8 sps:$4 sm:$0xff]  }
  0x84   : > { %502 = vmatprep.subr.bf16.mxu0 %v947_v7  ;;  %v980_v31 = vld [vmem:[%s1398_s26 + $0xe4] ss:$8 sps:$4 sm:$0xff]   ;;  %v982_v32 = vld [vmem:[%s1398_s26 + $0xe0] ss:$8 sps:$4 sm:$0xff]   ;;  %v983_v33 = vld [vmem:[%s1398_s26 + $0xf4] ss:$8 sps:$4 sm:$0xff]  }
  0x85   : > { %v985_v34 = vld [vmem:[%s1398_s26 + $0xf0] ss:$8 sps:$4 sm:$0xff]   ;;  %v298_v35 = vld [vmem:[%s1437_s25] sm:$0xff]  ;;  %s617_s26 = sshra.s32 (!%p811_p2), %s812_s21, 7 }
  0x86   : > { %v302_v36 = vpack.c.bf16 %v298_v35, %v298_v35  ;;  %v300_v37 = vld [vmem:[%s1418_s10] sm:$0xff]  ;;  %v301_v38 = vld [vmem:[%s1418_s10 + $0x8] sm:$0xff]  ;;  %s813_s30 = sshll.u32 (!%p811_p2), %s617_s26, 3 }
  0x87   : > { %503 = vmatpush1.bf16.msra.mxu0 %v949_v8 }
  0x88   : > { %504 = vmatprep.subr.bf16.mxu0 %v950_v9 }
  0x8b   : > { %505 = vmatpush1.bf16.msra.mxu0 %v952_v10 }
  0x8c   : > { %506 = vmatprep.subr.bf16.mxu0 %v953_v11 }
  0x8f   : > { %507 = vmatpush1.bf16.msra.mxu0 %v955_v12 }
  0x90   : > { %508 = vmatprep.subr.bf16.mxu0 %v956_v13 }
  0x93   : > { %509 = vmatpush1.bf16.msra.mxu0 %v958_v16 }
  0x94   : > { %510 = vmatprep.subr.bf16.mxu0 %v959_v17 }
  0x97   : > { %511 = vmatpush1.bf16.msra.mxu0 %v961_v18  ;;  %v589_v18 = vshrl.u32 (!%p811_p2), %v588_v14, 7 }
  0x98   : > { %512 = vmatprep.subr.bf16.mxu0 %v962_v19 }
  0x99   : > { %v590_v19 = vsub.s32 (!%p811_p2), 0, %v589_v18 }
  0x9b   : > { %513 = vmatpush1.bf16.msra.mxu0 %v964_v20  ;;  %v586_v20 = vld [vmem:[%s279_s11] sm:$0x3] (!%p811_p2)  ;;  %s620_s11 = scalar_lea.vmem (!%p811_p2), [#allocation2], %s813_s30 }
  0x9c   : > { %514 = vmatprep.subr.bf16.mxu0 %v965_v21  ;;  %v594_v21 = vsub.s32 (!%p811_p2), 1, %v589_v18 }
  0x9f   : > { %515 = vmatpush1.bf16.msra.mxu0 %v967_v22  ;;  %v600_v22 = vld [vmem:[%s284_s6] sm:$0x3] (!%p811_p2) }
  0xa0   : > { %516 = vmatprep.subr.bf16.mxu0 %v968_v23  ;;  %v591_v23 = vrot.slane (!%p811_p2), %v586_v20, %v590_v19 }
  0xa3   : > { %517 = vmatpush1.bf16.msra.mxu0 %v970_v24 }
  0xa4   : > { %518 = vmatprep.subr.bf16.mxu0 %v971_v25  ;;  %v595_v25 = vrot.slane (!%p811_p2), %v586_v20, %v594_v21 }
  0xa7   : > { %519 = vmatpush1.bf16.msra.mxu0 %v973_v26 }
  0xa8   : > { %520 = vmatprep.subr.bf16.mxu0 %v974_v27 }
  0xab   : > { %521 = vmatpush1.bf16.msra.mxu0 %v976_v28  ;;  %v605_v28 = vrot.slane (!%p811_p2), %v600_v22, %v590_v19 }
  0xac   : > { %522 = vmatprep.subr.bf16.mxu0 %v977_v29 }
  0xaf   : > { %523 = vmatpush1.bf16.msra.mxu0 %v979_v30  ;;  %v609_v30 = vrot.slane (!%p811_p2), %v600_v22, %v594_v21 }
  0xb0   : > { %524 = vmatprep.subr.bf16.mxu0 %v980_v31 }
  0xb3   : > { %525 = vmatpush1.bf16.msra.mxu0 %v982_v32 }
  0xb4   : > { %526 = vmatprep.subr.bf16.mxu0 %v983_v33 }
  0xb7   : > { %527 = vmatpush1.bf16.msra.mxu0 %v985_v34  ;;  %v621_v34 = vld [vmem:[%s620_s11] sm:$0xff] (!%p811_p2) }
  0xba   : > { %529 = vmatmul.mubr.bf16.vlgmr.msra.gmra.mrb[0].mxu0 %v302_v36 }
 0x18b   : > { %544 = sbr.rel (%p811_p2) target bundleno = 465 (0x1d1), region = 52 }
 0x18d   : > { %v530_v39 = vpop.f32.mrb[0].mxu0 }
 0x18e   : > { %v537_v40 = vadd.f32 %v530_v39, %v300_v37  ;;  %v532_v41 = vpop.f32.mrb[1].mxu0  ;;  %v622_v37 = vld [vmem:[%s620_s11 + $0x8] sm:$0xff] (!%p811_p2) }
 0x18f   : > { %v538_v42 = vadd.f32 %v532_v41, %v301_v38  ;;  %v534_v43 = vpop.f32.mrb[2].mxu0 }
 0x190   : > { %539 = vst [vmem:[%s1418_s10] sm:$0xff] %v537_v40  ;;  %v535_v44 = vpop.f32.mrb[3].mxu0 }
 0x191   : > { %540 = vst [vmem:[%s1418_s10 + $0x8] sm:$0xff] %v538_v42 }
 0x197   : > { %v545_v45 = vld [vmem:[%s1418_s10] sm:$0xff] }
 0x198   : > { %v547_v46 = vrot.slane %v545_v45, 4  ;;  %v546_v47 = vld [vmem:[%s1418_s10 + $0x8] sm:$0xff] }
 0x199   : > { %v553_v48 = vrot.slane %v546_v47, 4 }
 0x19a   : > { %v548_v49 = vadd.f32 %v547_v46, %v545_v45 }
 0x19b   : > { %v554_v50 = vadd.f32 %v553_v48, %v546_v47 }
 0x19c   : > { %v549_v51 = vrot.slane %v548_v49, 2 }
 0x19d   : > { %v555_v52 = vrot.slane %v554_v50, 2 }
 0x19e   : > { %v550_v53 = vadd.f32 %v549_v51, %v548_v49 }
 0x19f   : > { %v556_v54 = vadd.f32 %v555_v52, %v554_v50 }
 0x1a0   : > { %v551_v55 = vrot.slane %v550_v53, 1 }
 0x1a1   : > { %v557_v56 = vrot.slane %v556_v54, 1 }
 0x1a2   : > { %v552_v57 = vadd.f32 %v551_v55, %v550_v53 }
 0x1a3   : > { %v558_v58 = vadd.f32 %v557_v56, %v556_v54 }
 0x1a4   : > { %v560_v59 = vmul.f32 0.125, %v552_v57 }
 0x1a5   : > { %v561_v60 = vmul.f32 0.125, %v558_v58 }
 0x1a6   : > { %v562_v61 = vsub.f32 %v545_v45, %v560_v59 }
 0x1a7   : > { %v563_v62 = vsub.f32 %v546_v47, %v561_v60 }
 0x1a8   : > { %v564_v63 = vmul.f32 %v562_v61, %v562_v61 }
 0x1a9   : > { %v565_v0 = vmul.f32 %v563_v62, %v563_v62 }
 0x1aa   : > { %v566_v1 = vrot.slane %v564_v63, 4 }
 0x1ab   : > { %v572_v2 = vrot.slane %v565_v0, 4 }
 0x1ac   : > { %v567_v3 = vadd.f32 %v566_v1, %v564_v63 }
 0x1ad   : > { %v573_v4 = vadd.f32 %v572_v2, %v565_v0 }
 0x1ae   : > { %v568_v5 = vrot.slane %v567_v3, 2 }
 0x1af   : > { %v574_v6 = vrot.slane %v573_v4, 2 }
 0x1b0   : > { %v569_v7 = vadd.f32 %v568_v5, %v567_v3 }
 0x1b1   : > { %v575_v8 = vadd.f32 %v574_v6, %v573_v4 }
 0x1b2   : > { %v570_v9 = vrot.slane %v569_v7, 1 }
 0x1b3   : > { %v576_v10 = vrot.slane %v575_v8, 1 }
 0x1b4   : > { %v571_v11 = vadd.f32 %v570_v9, %v569_v7 }
 0x1b5   : > { %v577_v12 = vadd.f32 %v576_v10, %v575_v8 }
 0x1b6   : > { %v578_v13 = vmul.f32 0.125, %v571_v11 }
 0x1b7   : > { %v579_v15 = vmul.f32 0.125, %v577_v12 }
 0x1b8   : > { %v580_v16 = vadd.f32 1e-05, %v578_v13 }
 0x1b9   : > { %v581_v17 = vadd.f32 1e-05, %v579_v15 }
 0x1ba   : > { %986 = vrsqrt.f32 %v580_v16 }
 0x1bb   : > { %988 = vrsqrt.f32 %v581_v17 }
 0x1c4   : > { %v987_v24 = vpop.eup %986 }
 0x1c5   : > { %v989_v26 = vpop.eup %988  ;;  %v584_v27 = vmul.f32 %v987_v24, %v562_v61 }
 0x1c6   : > { %v585_v29 = vmul.f32 %v989_v26, %v563_v62 }
 0x1c7   : > { %v598_v31 = vmul.f32 %v591_v23, %v584_v27 }
 0x1c8   : > { %v599_v32 = vmul.f32 %v595_v25, %v585_v29 }
 0x1c9   : > { %v612_v33 = vadd.f32 %v605_v28, %v598_v31 }
 0x1ca   : > { %v613_v35 = vadd.f32 %v609_v30, %v599_v32 }
 0x1cb   : > { %v614_v36 = vmax.f32 %v612_v33, 0.0 }
 0x1cc   : > { %v615_v38 = vmax.f32 %v613_v35, 0.0 }
 0x1cd   : > { %v623_v39 = vadd.f32 %v621_v34, %v614_v36 }
 0x1ce   : > { %v624_v40 = vadd.f32 %v622_v37, %v615_v38 }
 0x1cf   : > { %625 = vst [vmem:[%s1418_s10] sm:$0xff] %v623_v39 }
 0x1d0   : > { %626 = vst [vmem:[%s1418_s10 + $0x8] sm:$0xff] %v624_v40 }
 0x1d1 PF: > { %s820_s9 = sshll.u32 %s1162_s22, 8  ;;  %s1583_s6 = sld [smem:[#allocation17_spill]] }
 0x1d2   : > { %s642_s0 = sshll.u32 %s1418_s10, 4  ;;  %s628_s15 = scalar_lea.sflag [#allocation4], %s271_s4  ;;  %s643_s0 = int_to_ptr.vmem [resolvable:$true] %s642_s0 }
 0x1d3   : > { %s1048_s25 = scalar_lea.vmem %s643_s0, 256  ;;  %p1584_p3 = scmp.ne.s32.totalorder %s1568_s7, 0 }
 0x1d4   : > { %p1049_p12 = scmp.ne.s32.totalorder %s643_s0, %s1048_s25  ;;  %s1182_s21 = smov [#allocation7]  }
 0x1d5   : > { %s1052_s8 = sshll.u32 %s1182_s21, 4  ;;  %s1053_s8 = int_to_ptr.vmem [resolvable:$false] %s1052_s8 }
 0x1d6   : > { %p1050_p6 = pnand %p1049_p12, %p1584_p3  ;;  %s1054_s28 = scalar_lea.vmem %s1053_s8, 512 }
 0x1d7   : > { %s1484_s12 = scalar_lea.hbm %s1583_s6, %s820_s9  ;;  %p1055_p0 = scmp.lt.s32.totalorder %s643_s0, %s1053_s8 }
 0x1d8   : > { %p1051_p10 = pneg %p1050_p6  ;;  %p1056_p8 = scmp.lt.s32.totalorder %s1054_s28, %s1048_s25 }
 0x1da   : > { %p1057_p11 = por %p1056_p8, %p1055_p0 }
 0x1dc   : > { %p1058_p13 = pnand %p1057_p11, %p1051_p10 }
 0x1de   : > { %1061 = shalt.err (!%p1058_p13)
}
 0x1df   : > { %s1062_s22 = scalar_lea.hbm %s1484_s12, 256  ;;  %s1066_s26 = scalar_lea.hbm %s1583_s6, 512 }
 0x1e0   : > { %p1063_p7 = scmp.ne.s32.totalorder %s1484_s12, %s1062_s22  ;;  %p1067_p5 = scmp.lt.u32.totalorder %s1484_s12, %s1583_s6 }
 0x1e1   : > { %p1068_p4 = scmp.lt.u32.totalorder %s1066_s26, %s1062_s22  ;;  %p1070_p12 = scmp.lt.u32.totalorder %s1062_s22, %s1484_s12 }
 0x1e2   : > { %p1064_p9 = pnand %p1063_p7, %p1584_p3 }
 0x1e3   : > { %p1069_p2 = por %p1068_p4, %p1067_p5 }
 0x1e4   : > { %p1065_p1 = pneg %p1064_p9 }
 0x1e5   : > { %p1071_p6 = por %p1070_p12, %p1069_p2 }
 0x1e7   : > { %p1072_p10 = pnand %p1071_p6, %p1065_p1 }
 0x1e9   : > { %1075 = shalt.err (!%p1072_p10)
}
 0x1ea   : > { %827 = dma.vmem_to_hbm [thread:$0]  (%p1584_p3), %s643_s0, 256, %s1484_s12, %s628_s15  }
 0x1eb PF: > { %s1585_s30 = sld [smem:[#allocation12_spill]]  ;;  %s1586_s11 = sld [smem:[#allocation11_spill]] }
 0x1ec   : > { %s1587_s9 = sld [smem:[#allocation13_spill]] }
 0x1f1   : > { %p844_p0 = scmp.ge.s32.totalorder %s1585_s30, 2  ;;  %s654_s18 = sand.u32 1, %s1586_s11  }
 0x1f2   : > { %p1588_p8 = scmp.ne.s32.totalorder %s1587_s9, 0  ;;  %s655_s27 = scalar_lea.sflag [#allocation4], %s654_s18 }
 0x1f4   : > { %p838_p11 = pnand %p844_p0, %p1588_p8 }
 0x1f6   : > { %1129 = dma.done.wait (!%p838_p11), %s655_s27, 256  }
 0x1f7   : > { %1131 = vsyncadd (!%p838_p11), %s655_s27, 4294967040  ;;  %s21_s25 = sadd.s32 1, %s1585_s30   ;;  %s1589_s7 = sld [smem:[#allocation14_spill]] }
 0x1f8   : > { %p18_p13 = scmp.ge.s32.totalorder %s21_s25, 6   ;;  %s1590_s12 = sld [smem:[#allocation15_spill]] }
 0x1f9   : > { %s1591_s15 = smov %s1138_s16  ;;  %s1592_s16 = smov %s1142_s17 }
 0x1fa   : > { %s1593_s17 = smov %s1356_s14  ;;  %s1594_s18 = smov %s1150_s19 }
 0x1fb   : > { %s1595_s19 = smov %s1154_s20  ;;  %s1596_s20 = smov %s1361_s5 }
 0x1fc   : > { %s1597_s21 = smov %s1166_s23  ;;  %s1598_s22 = smov %s1170_s24 }
 0x1fd   : > { %s1599_s23 = smov %s1589_s7  ;;  %20 = sbr.rel (!%p18_p13) target bundleno = 13 (0xd), region = 102 }
 0x1fe   : > { %s1600_s24 = smov %s1590_s12 }
 0x204   :  { %660 = vsyncpa [#allocation3], 1 }
 0x205   :  { %662 = vsyncpa [#allocation3 + $0x1], 1 }
 0x206   :  { %663 = vsyncpa [#allocation6], 1 }
 0x207   :  { %665 = vsyncpa [#allocation6 + $0x1], 1 }
 0x208   :  { %666 = vsyncpa [#allocation4], 1 }
 0x209   :  { %668 = vsyncpa [#allocation4 + $0x1], 1 }

</bundles_post_ra>
